<compile_context>
chip_gen: v5e
topology: v5e:2x2
jax: 0.10.0
libtpu: 0.0.40
codegen_flags: <defaults>
</compile_context>

<pallas_src>
import functools

import jax
import jax.numpy as jnp
import numpy as np
from jax.experimental import pallas as pl
from jax.experimental.pallas import tpu as pltpu


def _round_up(x, m):
    return ((x + m - 1) // m) * m


# ---------------------------------------------------------------------------
# Kernels
# ---------------------------------------------------------------------------

def _qlin_kernel_single_k(x_ref, w_ref, b_ref, o_ref):
    """K fits in one tile: dot + bias -> one lane-dense store, no scratch."""
    acc = jnp.dot(x_ref[...], w_ref[...], preferred_element_type=jnp.float32)
    o_ref[...] = (acc + b_ref[...]).astype(o_ref.dtype)


def _qlin_kernel_multi_k(x_ref, w_ref, b_ref, o_ref, acc_ref):
    """K split over the (last, 'arbitrary') grid axis with an f32 VMEM acc."""
    k = pl.program_id(2)
    nk = pl.num_programs(2)
    part = jnp.dot(x_ref[...], w_ref[...], preferred_element_type=jnp.float32)

    @pl.when(k == 0)
    def _():
        acc_ref[...] = part                      # no separate zero-fill pass

    @pl.when(jnp.logical_and(k > 0, k < nk - 1))
    def _():
        acc_ref[...] = acc_ref[...] + part

    @pl.when(k == nk - 1)
    def _():
        # Fold the last partial product and the bias into the single store.
        o_ref[...] = (acc_ref[...] + part + b_ref[...]).astype(o_ref.dtype)


# ---------------------------------------------------------------------------
# Tile heuristics
# ---------------------------------------------------------------------------

def _pick_tm(n_rows):
    """Batch tile: multiple of 16 (bf16 sublane packing), <=512, low padding
    waste, and >=2 blocks on the parallel M axis when the batch allows (v7x)."""
    np16 = _round_up(max(n_rows, 16), 16)
    if np16 <= 256:
        return np16                               # single block; tiny problem
    if np16 <= 512:
        return _round_up((np16 + 1) // 2, 16)     # 2 blocks, <=16 padded rows
    for t in (512, 256, 128, 64, 32, 16):         # bound padding waste to 25%
        if _round_up(np16, t) - np16 <= np16 // 4:
            return t
    return 16


def _pick_tn(o_pad):
    if o_pad <= 512:
        return o_pad
    for t in (512, 256, 128):
        if o_pad % t == 0:
            return t
    return 128


def _pick_tk(k_pad):
    if k_pad <= 1024:
        return k_pad
    for t in (1024, 512, 256, 128):
        if k_pad % t == 0:
            return t
    return 128


# ---------------------------------------------------------------------------
# Wrapper
# ---------------------------------------------------------------------------

def quaternion_linear(x, r_w, i_w, j_w, k_w, bias=None, *,
                      compute_dtype=jnp.bfloat16,
                      force_pallas=False,
                      tm=None, tn=None, tk=None):
    """Pallas equivalent of torch quaternion_linear(input, r, i, j, k, bias)."""
    N, F = x.shape
    Iq, Oq = r_w.shape
    assert F == 4 * Iq, "input features must be 4 * Iq"
    K = 4 * Iq
    O = 4 * Oq

    # Fused Hamilton weight, identical layout to the torch helper's cat-of-cats.
    # TODO(synk): under jit this concat is hoisted/CSE'd by XLA; for a pure
    # inference loop callers should cache W across calls to avoid re-streaming
    # the 4x-sized fused weight through HBM every step.
    W = jnp.concatenate(
        [
            jnp.concatenate([r_w, i_w, j_w, k_w], axis=1),
            jnp.concatenate([-i_w, r_w, k_w, -j_w], axis=1),
            jnp.concatenate([-j_w, -k_w, r_w, i_w], axis=1),
            jnp.concatenate([-k_w, j_w, -i_w, r_w], axis=1),
        ],
        axis=0,
    )  # (4*Iq, 4*Oq)

    if bias is None:
        bias = jnp.zeros((O,), jnp.float32)

    # Tiny-problem bypass: pallas_call fixed cost dwarfs ~a few-hundred KFLOP.
    if not force_pallas and 2 * N * K * O < (1 << 22):
        out = (x.astype(jnp.float32) @ W.astype(jnp.float32)
               + bias.astype(jnp.float32))
        return out.astype(x.dtype)

    # Pad N (out) and K (in) to lane multiples; pick tiles.
    K_pad = _round_up(K, 128)
    O_pad = _round_up(O, 128)
    tm_ = tm if tm is not None else _pick_tm(N)
    tn_ = tn if tn is not None else _pick_tn(O_pad)
    tk_ = tk if tk is not None else _pick_tk(K_pad)
    M_pad = _round_up(max(N, tm_), tm_)

    xp = x.astype(compute_dtype)
    if (M_pad != N) or (K_pad != K):
        xp = jnp.pad(xp, ((0, M_pad - N), (0, K_pad - K)))
    Wp = W.astype(compute_dtype)
    if (K_pad != K) or (O_pad != O):
        Wp = jnp.pad(Wp, ((0, K_pad - K), (0, O_pad - O)))
    b2 = bias.astype(jnp.float32).reshape(1, O)
    if O_pad != O:
        b2 = jnp.pad(b2, ((0, 0), (0, O_pad - O)))

    gm, gn, gk = M_pad // tm_, O_pad // tn_, K_pad // tk_
    out_dtype = x.dtype
    osize = jnp.dtype(out_dtype).itemsize
    dsize = jnp.dtype(compute_dtype).itemsize

    # Explicit VMEM budget (double-buffered tiles + acc + bias), with headroom;
    # bounded so it stays sane on v5e (16 MiB default scoped) and v7x (64 MiB).
    vmem_bytes = 2 * (tm_ * tk_ * dsize + tk_ * tn_ * dsize
                      + tm_ * tn_ * osize + tn_ * 4)
    if gk > 1:
        vmem_bytes += tm_ * tn_ * 4
    vmem_limit = int(min(max(vmem_bytes * 3 // 2 + (1 << 20), 4 << 20), 48 << 20))

    cost = pl.CostEstimate(
        flops=2 * M_pad * K_pad * O_pad,
        transcendentals=0,
        bytes_accessed=(M_pad * K_pad * dsize
                        + K_pad * O_pad * dsize
                        + M_pad * O_pad * osize
                        + O_pad * 4),
    )

    if gk == 1:
        out = pl.pallas_call(
            _qlin_kernel_single_k,
            out_shape=jax.ShapeDtypeStruct((M_pad, O_pad), out_dtype),
            grid=(gm, gn),
            in_specs=[
                pl.BlockSpec((tm_, K_pad), lambda m, n: (m, 0)),
                pl.BlockSpec((K_pad, tn_), lambda m, n: (0, n)),
                pl.BlockSpec((1, tn_), lambda m, n: (0, n)),
            ],
            out_specs=pl.BlockSpec((tm_, tn_), lambda m, n: (m, n)),
            compiler_params=pltpu.CompilerParams(
                dimension_semantics=("parallel", "parallel"),
                vmem_limit_bytes=vmem_limit,
            ),
            cost_estimate=cost,
        )(xp, Wp, b2)
    else:
        out = pl.pallas_call(
            _qlin_kernel_multi_k,
            out_shape=jax.ShapeDtypeStruct((M_pad, O_pad), out_dtype),
            grid=(gm, gn, gk),
            in_specs=[
                pl.BlockSpec((tm_, tk_), lambda m, n, k: (m, k)),
                pl.BlockSpec((tk_, tn_), lambda m, n, k: (k, n)),
                pl.BlockSpec((1, tn_), lambda m, n, k: (0, n)),
            ],
            out_specs=pl.BlockSpec((tm_, tn_), lambda m, n, k: (m, n)),
            scratch_shapes=[pltpu.VMEM((tm_, tn_), jnp.float32)],
            compiler_params=pltpu.CompilerParams(
                dimension_semantics=("parallel", "parallel", "arbitrary"),
                vmem_limit_bytes=vmem_limit,
            ),
            cost_estimate=cost,
        )(xp, Wp, b2)

    return out[:N, :O]


def quaternion_linear_ref(x, r, i, j, k, b):
    """Pure-JAX reference matching the PyTorch quaternion_linear semantics."""
    cat_r = jnp.concatenate([r, -i, -j, -k], axis=0)
    cat_i = jnp.concatenate([i, r, -k, j], axis=0)
    cat_j = jnp.concatenate([j, k, r, -i], axis=0)
    cat_k = jnp.concatenate([k, -j, i, r], axis=0)
    W = jnp.concatenate([cat_r, cat_i, cat_j, cat_k], axis=1)
    return x @ W + b


# ---------------------------------------------------------------------------
# Demo
# ---------------------------------------------------------------------------

def _make_weights(key, Iq, Oq):
    # Deterministic glorot-like quaternion init scale s = 1/sqrt(2*(fan_in+fan_out)).
    # TODO(synk): full scipy-chi based quaternion_init not reproduced.
    kr, ki, kj, kk = jax.random.split(key, 4)
    s = 1.0 / np.sqrt(2.0 * (Iq + Oq))
    mk = functools.partial(jax.random.uniform, shape=(Iq, Oq),
                           dtype=jnp.float32, minval=-s, maxval=s)
    return mk(kr), mk(ki), mk(kj), mk(kk)


if __name__ == "__main__":
    key = jax.random.PRNGKey(0)
    k1, k2, k3, k4, k5 = jax.random.split(key, 5)

    # ---- Case 1: module demo config (in=32, out=32, batch=16) -> single-K path
    in_features, out_features, batch = 32, 32, 16
    Iq, Oq = in_features // 4, out_features // 4
    r_w, i_w, j_w, k_w = _make_weights(k1, Iq, Oq)
    bias = jnp.zeros((out_features,), jnp.float32)       # module fills bias with 0
    x = jax.random.normal(k2, (batch, in_features), jnp.float32)

    out = quaternion_linear(x, r_w, i_w, j_w, k_w, bias, force_pallas=True)
    out = jax.block_until_ready(out)
    ref = quaternion_linear_ref(x, r_w, i_w, j_w, k_w, bias)
    np.testing.assert_allclose(np.asarray(out), np.asarray(ref),
                               rtol=2e-2, atol=2e-2)      # bf16 MXU tolerance

    # ---- Case 2: exercise the multi-K accumulator path (in=1152, out=128)
    in_features2, out_features2, batch2 = 1152, 128, 32
    Iq2, Oq2 = in_features2 // 4, out_features2 // 4
    r2, i2, j2, k2w = _make_weights(k3, Iq2, Oq2)
    bias2 = jax.random.normal(k4, (out_features2,), jnp.float32) * 0.1
    x2 = jax.random.normal(k5, (batch2, in_features2), jnp.float32)

    out2 = quaternion_linear(x2, r2, i2, j2, k2w, bias2, force_pallas=True)
    out2 = jax.block_until_ready(out2)
    ref2 = quaternion_linear_ref(x2, r2, i2, j2, k2w, bias2)
    np.testing.assert_allclose(np.asarray(out2), np.asarray(ref2),
                               rtol=2.5e-2, atol=2.5e-2)

    print("KERNEL_OK")
</pallas_src>

<mosaic_0001>
module attributes {stable_mosaic.version = 11 : i64} {
  func.func @_qlin_kernel_single_k(%arg0: i32, %arg1: i32, %arg2: memref<16x128xbf16, #tpu.memory_space<vmem>>, %arg3: memref<128x128xbf16, #tpu.memory_space<vmem>>, %arg4: memref<1x128xf32, #tpu.memory_space<vmem>>, %arg5: memref<16x128xf32, #tpu.memory_space<vmem>>) attributes {dimension_semantics = [#tpu.dimension_semantics<parallel>, #tpu.dimension_semantics<parallel>], iteration_bounds = array<i64: 1, 1>, scalar_prefetch = 0 : i64, scratch_operands = 0 : i64, tpu.core_type = #tpu.core_type<tc>, window_params = [{transform_indices = @transform_0, window_bounds = array<i64: 16, 128>}, {transform_indices = @transform_1, window_bounds = array<i64: 128, 128>}, {transform_indices = @transform_2, window_bounds = array<i64: 1, 128>}, {transform_indices = @transform_3, window_bounds = array<i64: 16, 128>}]} {
    %c0 = arith.constant 0 : index
    %c0_0 = arith.constant 0 : index
    %0 = vector.load %arg2[%c0, %c0_0] : memref<16x128xbf16, #tpu.memory_space<vmem>>, vector<16x128xbf16>
    %c0_1 = arith.constant 0 : index
    %c0_2 = arith.constant 0 : index
    %1 = vector.load %arg3[%c0_1, %c0_2] : memref<128x128xbf16, #tpu.memory_space<vmem>>, vector<128x128xbf16>
    %cst = arith.constant dense<0.000000e+00> : vector<16x128xf32>
    %2 = tpu.matmul %0, %1, %cst {dimension_numbers = #tpu.dot_dimension_numbers<[1], [0], [0], [1], [0, 0, 1, 1], [], []>} : vector<16x128xbf16>, vector<128x128xbf16>, vector<16x128xf32> -> vector<16x128xf32>
    %c0_3 = arith.constant 0 : index
    %c0_4 = arith.constant 0 : index
    %3 = vector.load %arg4[%c0_3, %c0_4] : memref<1x128xf32, #tpu.memory_space<vmem>>, vector<1x128xf32>
    %4 = vector.broadcast %3 : vector<1x128xf32> to vector<16x128xf32>
    %5 = arith.addf %2, %4 : vector<16x128xf32>
    %c0_5 = arith.constant 0 : index
    %c0_6 = arith.constant 0 : index
    %6 = vector.load %arg5[%c0_5, %c0_6] : memref<16x128xf32, #tpu.memory_space<vmem>>, vector<16x128xf32>
    tpu.vector_store %arg5[%c0_5, %c0_6], %5 {strides = array<i32>} : memref<16x128xf32, #tpu.memory_space<vmem>>, vector<16x128xf32>,
    return
  }
  func.func @transform_0(%arg0: i32, %arg1: i32) -> (i32, i32) {
    %c0_i32 = arith.constant 0 : i32
    %c0_i32_0 = arith.constant 0 : i32
    return %arg0, %c0_i32 : i32, i32
  }
  func.func @transform_1(%arg0: i32, %arg1: i32) -> (i32, i32) {
    %c0_i32 = arith.constant 0 : i32
    %c0_i32_0 = arith.constant 0 : i32
    return %c0_i32, %arg1 : i32, i32
  }
  func.func @transform_2(%arg0: i32, %arg1: i32) -> (i32, i32) {
    %c0_i32 = arith.constant 0 : i32
    %c0_i32_0 = arith.constant 0 : i32
    return %c0_i32, %arg1 : i32, i32
  }
  func.func @transform_3(%arg0: i32, %arg1: i32) -> (i32, i32) {
    %c0_i32 = arith.constant 0 : i32
    return %arg0, %arg1 : i32, i32
  }
}

</mosaic_0001>

<bundles_post_ra>
// kernel: tpu_custom_call.1
= control target key start
LH: loop header
LB: loop body
LE: loop exit
PB: predicated region body
PF: predicated region fallthrough
CT: control target
= control target key end

     0   :  { %8 = vsyncpa [#allocation3], 0  ;;  %s329_s0 = inlined_call_operand.hbm [shape: bf16[16,128], index: 0, kind: input, shape index: {}]   ;;  %s330_s1 = inlined_call_operand.hbm [shape: bf16[128,128], index: 1, kind: input, shape index: {}]   ;;  %s331_s2 = inlined_call_operand.vmem [shape: f32[1,128], index: 2, kind: input, shape index: {}]   ;;  %s332_s3 = inlined_call_operand.hbm [shape: f32[16,128], index: 3, kind: output, shape index: {}]  }
   0x1   :  { %9 = vsyncpa [#allocation6], 0 }
   0x2   :  { %10 = vsyncpa [#allocation4], 0  ;;  %s15_s14 = sshll.u32 %s329_s0, 4  ;;  %s290_s15 = smov [#allocation2]   ;;  %s16_s14 = int_to_ptr.hbm [resolvable:$true] %s15_s14 }
   0x3   :  { %s17_s16 = sshll.u32 %s290_s15, 4  ;;  %s28_s19 = sshll.u32 %s330_s1, 4  ;;  %s18_s16 = int_to_ptr.vmem [resolvable:$true] %s17_s16  ;;  %s29_s19 = int_to_ptr.hbm [resolvable:$true] %s28_s19 }
   0x4   :  { %s291_s20 = smov 64   ;;  %s292_s21 = smov 4  }
   0x5   :  { %23 = dma.hbm_to_vmem [thread:$0]  %s16_s14, 128, %s18_s16, [#allocation3], %s291_s20, %s291_s20, %s292_s21  }
   0x6   :  { %s293_s22 = smov [#allocation5]  }
   0x7   :  { %s30_s23 = sshll.u32 %s293_s22, 4  ;;  %s31_s23 = int_to_ptr.vmem [resolvable:$true] %s30_s23 }
   0x8   :  { %36 = dma.hbm_to_vmem [thread:$0]  %s29_s19, 1024, %s31_s23, [#allocation6], %s291_s20, %s291_s20, %s292_s21  }
   0x9   :  { %284 = dma.done.wait [#allocation3], 128  }
   0xa   :  { %285 = vsyncadd [#allocation3], 4294967168 }
   0xb   :  { %286 = dma.done.wait [#allocation6], 1024  }
   0xc   :  { %287 = vsyncadd [#allocation6], 4294966272  ;;  %v203_v0 = vld [vmem:[#allocation5 + $0x38] sm:$0xff]  ;;  %v202_v1 = vld [vmem:[#allocation5 + $0x30] sm:$0xff]  ;;  %s294_s24 = smov [#allocation7]   ;;  %s145_s28 = sshll.u32 %s332_s3, 4  ;;  %s146_s28 = int_to_ptr.hbm [resolvable:$true] %s145_s28 }
   0xd   :  { %123 = vmatpush.bf16.msra.mxu0 %v203_v0  ;;  %v201_v2 = vld [vmem:[#allocation5 + $0x28] sm:$0xff]  ;;  %v200_v3 = vld [vmem:[#allocation5 + $0x20] sm:$0xff]  ;;  %v199_v4 = vld [vmem:[#allocation5 + $0x18] sm:$0xff]  ;;  %s143_s25 = sshll.u32 %s294_s24, 4  ;;  %s295_s29 = smov 128   ;;  %s144_s25 = int_to_ptr.vmem [resolvable:$true] %s143_s25 }
   0xe   :  { %v198_v5 = vld [vmem:[#allocation5 + $0x10] sm:$0xff]  ;;  %v197_v6 = vld [vmem:[#allocation5 + $0x8] sm:$0xff]  ;;  %v196_v7 = vld [vmem:[#allocation5] sm:$0xff]  ;;  %s296_s30 = smov 8  }
   0xf   :  { %v195_v8 = vld [vmem:[#allocation2] sm:$0xff] }
  0x10   :  { %v211_v9 = vld [vmem:[%s331_s2] ss:$0 sm:$0xff] }
  0x11   :  { %124 = vmatpush.bf16.msra.mxu0 %v202_v1 }
  0x15   :  { %125 = vmatpush.bf16.msra.mxu0 %v201_v2 }
  0x19   :  { %126 = vmatpush.bf16.msra.mxu0 %v200_v3 }
  0x1d   :  { %127 = vmatpush.bf16.msra.mxu0 %v199_v4 }
  0x21   :  { %128 = vmatpush.bf16.msra.mxu0 %v198_v5 }
  0x25   :  { %129 = vmatpush.bf16.msra.mxu0 %v197_v6 }
  0x29   :  { %130 = vmatpush.bf16.msra.mxu0 %v196_v7 }
  0x2c   :  { %131 = vmatmul.bf16.vlgmr.msra.gmra.mxu0 %v195_v8 }
  0xa9   :  { %v132_v10 = vpop.f32.mrf.mxu0 }
  0xaa   :  { %v133_v11 = vadd.f32 %v211_v9, %v132_v10 }
  0xac   :  { %137 = vst [vmem:[#allocation7] sm:$0xff] %v133_v11 }
  0xb1   :  { %v134_v12 = vpop.f32.mrf.mxu0 }
  0xb2   :  { %v135_v13 = vadd.f32 %v211_v9, %v134_v12 }
  0xb4   :  { %138 = vst [vmem:[#allocation7 + $0x8] sm:$0xff] %v135_v13 }
  0xb5   :  { %151 = dma.vmem_to_hbm [thread:$0]  %s144_s25, 256, %s146_s28, [#allocation4], %s295_s29, %s295_s29, %s296_s30  }
  0xb6   :  { %288 = dma.done.wait [#allocation4], 256  }
  0xb7   :  { %289 = vsyncadd [#allocation4], 4294967040 }
  0xb8   :  { %156 = vsyncpa [#allocation3], 1 }
  0xb9   :  { %157 = vsyncpa [#allocation6], 1 }
  0xba   :  { %158 = vsyncpa [#allocation4], 1 }

</bundles_post_ra>
